<compile_context>
chip_gen: v7x
topology: tpu7x:2x2x1
jax: 0.10.0
libtpu: 0.0.40
codegen_flags: <defaults>
</compile_context>

<pallas_src>
import functools

import jax
import jax.numpy as jnp
from jax.experimental import pallas as pl
from jax.experimental.pallas import tpu as pltpu


# ---------------------------------------------------------------------------
# Helpers
# ---------------------------------------------------------------------------
def _round_up(x, m):
    return -(-x // m) * m


def _choose_seq_tile(seq_len):
    """(tile, padded_seq_len): prefer large tiles (fill MXU M dim, amortize the
    ~0.35us per-grid-step overhead); pad S up rather than use tiny tiles."""
    for ts in (512, 256, 128):
        if seq_len % ts == 0:
            return ts, seq_len
    if seq_len > 256:
        return 256, _round_up(seq_len, 256)
    s_pad = _round_up(seq_len, 8)
    return s_pad, s_pad


def _pad_rows_for_onehot(n_rows, chunk_cap=1024):
    """(padded_rows, chunk): rows padded so the one-hot matmul can be chunked
    into equal, 128-aligned pieces of at most `chunk_cap` lanes."""
    if n_rows <= chunk_cap:
        p = _round_up(n_rows, 128)
        return p, p
    p = _round_up(n_rows, chunk_cap)
    return p, chunk_cap


def _vmem_capacity_bytes():
    try:
        return int(pltpu.get_tpu_info().vmem_capacity_bytes)
    except Exception:   # conservative fallback: v7x has 64 MiB per TensorCore
        return 64 << 20


def _dim_semantics(num_tiles, batch):
    # Both grid axes are independent; carry the megacore split (v7x: 2 TCs) on
    # the larger one.  On v5e/v6e this choice is ~neutral.
    if num_tiles >= batch:
        return ("parallel", "arbitrary")
    return ("arbitrary", "parallel")


# ---------------------------------------------------------------------------
# In-kernel one-hot gather (vocab-chunked MXU matmul)
# ---------------------------------------------------------------------------
def _onehot_gather(ids_col, table_ref, n_rows, chunk, compute_dtype):
    """rows = table[ids] via onehot(ids) @ table, accumulated in f32.

    ids_col   : (TS, 1) int32 column (token axis on sublanes).
    table_ref : VMEM ref (n_rows, H) stored in `compute_dtype`.
    n_rows must be a multiple of `chunk`.  Out-of-range ids select nothing
    (zero row) instead of reading garbage VMEM.
    """
    ts = ids_col.shape[0]
    h = table_ref.shape[1]
    num_chunks = n_rows // chunk

    def partial_dot(base, w):
        lane = base + jax.lax.broadcasted_iota(jnp.int32, (ts, chunk), 1)
        onehot = (ids_col == lane).astype(compute_dtype)   # exact 0/1 selection
        # No Precision.HIGHEST: selection is exact w.r.t. the table's storage
        # precision; default precision = single MXU pass.
        return jnp.dot(onehot, w, preferred_element_type=jnp.float32)

    if num_chunks == 1:
        return partial_dot(0, table_ref[...])

    def body(c, acc):
        start = pl.multiple_of(c * chunk, chunk)
        w = table_ref[pl.ds(start, chunk), :]
        return acc + partial_dot(c * chunk, w)

    return jax.lax.fori_loop(0, num_chunks, body,
                             jnp.zeros((ts, h), jnp.float32))


# ---------------------------------------------------------------------------
# Path 1: word table resident in VMEM, one-hot MXU gather
# ---------------------------------------------------------------------------
def _resident_kernel(ids_ref, word_ref, *rest, vocab_pad, vocab_chunk,
                     pos_mode, pos_pad, pos_chunk, compute_dtype):
    """One grid step = one (TS, H) output tile of one batch row.

    ids_ref : VMEM (TS, 1) int32 token ids (batch dim squeezed)
    word_ref: VMEM (vocab_pad, H) resident word table (compute_dtype)
    rest    : [pos_ref (TS,H)] or [pos_ids_ref (TS,1), pos_table_ref (pos_pad,H)]
              followed by out_ref (TS, H)
    """
    if pos_mode == "shared":
        pos_ref, out_ref = rest
    elif pos_mode == "per_batch":
        pos_ids_ref, pos_table_ref, out_ref = rest
    else:
        (out_ref,) = rest

    tile = _onehot_gather(ids_ref[...], word_ref, vocab_pad, vocab_chunk,
                          compute_dtype)                         # (TS, H) f32

    if pos_mode == "shared":
        tile = tile + pos_ref[...].astype(jnp.float32)
    elif pos_mode == "per_batch":
        tile = tile + _onehot_gather(pos_ids_ref[...], pos_table_ref,
                                     pos_pad, pos_chunk, compute_dtype)

    # Single dense lane-major (TS, H) store per grid step.
    out_ref[...] = tile.astype(out_ref.dtype)
    # TODO(synk): nn.Dropout(hidden_dropout_prob) is identity in eval mode; a
    # training-mode dropout would use pltpu.prng_seed/prng_random_bits here.


# ---------------------------------------------------------------------------
# Path 2: word table in HBM, SMEM ids + bounded-ring DMA row gather
# ---------------------------------------------------------------------------
def _hbm_gather_kernel(ids_smem, *refs, seq_pad, ts, nsem,
                       pos_mode, pos_pad, pos_chunk, compute_dtype):
    """refs: word_hbm, [pos ...], out_ref, gather_buf, sem."""
    if pos_mode == "shared":
        word_hbm, pos_ref, out_ref, gbuf, sem = refs
    elif pos_mode == "per_batch":
        word_hbm, pos_ids_ref, pos_table_ref, out_ref, gbuf, sem = refs
    else:
        word_hbm, out_ref, gbuf, sem = refs

    s = pl.program_id(0)
    b = pl.program_id(1)
    base = b * seq_pad + s * ts          # flat offset into the SMEM ids

    def issue(t, slot):
        tok = ids_smem[base + t]
        pltpu.make_async_copy(word_hbm.at[pl.ds(tok, 1), :],
                              gbuf.at[pl.ds(t, 1), :],
                              sem.at[slot]).start()

    # Bounded ring: at most `nsem` row-DMAs in flight.
    for slot in range(min(nsem, ts)):    # static prime loop (nsem is small)
        issue(slot, slot)

    @pl.loop(0, ts)
    def _(t):
        slot = t % nsem
        # Wait for the DMA that fills row t (same sem slot, same transfer size).
        pltpu.make_async_copy(word_hbm.at[pl.ds(0, 1), :],
                              gbuf.at[pl.ds(t, 1), :],
                              sem.at[slot]).wait()

        @pl.when(t + nsem < ts)
        def _():
            issue(t + nsem, slot)

    tile = gbuf[...].astype(jnp.float32)
    if pos_mode == "shared":
        tile = tile + pos_ref[...].astype(jnp.float32)
    elif pos_mode == "per_batch":
        tile = tile + _onehot_gather(pos_ids_ref[...], pos_table_ref,
                                     pos_pad, pos_chunk, compute_dtype)
    out_ref[...] = tile.astype(out_ref.dtype)


# ---------------------------------------------------------------------------
# Wrapper
# ---------------------------------------------------------------------------
def cell_spatial_foundation_embeddings(
        input_ids,
        word_embeddings,
        position_embeddings=None,
        position_ids=None,
        position_embedding_type="absolute",
        past_key_values_length=0,
        *,
        seq_tile=None,
        gather_compute_dtype=jnp.bfloat16,
        vmem_budget_bytes=None,
        force_hbm_gather=False,
        hbm_gather_inflight=8):
    """JAX/Pallas equivalent of CellSpatialFoundationEmbeddings.forward (eval).

    gather_compute_dtype: storage/compute dtype of the VMEM-resident tables used
      by the one-hot MXU gather.  bf16 halves VMEM + table DMA; the selection is
      exact, so outputs are the bf16-rounded table values (documented precision
      change vs the f32 PyTorch weights).
    """
    # TODO(synk): inputs_embeds path not implemented (wrapper takes input_ids
    # only); token_type_ids are unused by the reference module's forward.
    B, S = input_ids.shape
    V, H = word_embeddings.shape
    out_dtype = word_embeddings.dtype
    add_position = (position_embedding_type == "absolute")
    compute_dtype = jnp.dtype(gather_compute_dtype or word_embeddings.dtype)

    if seq_tile is None:
        TS, S_pad = _choose_seq_tile(S)
    else:
        assert seq_tile % 8 == 0, "seq_tile must be a multiple of 8"
        TS, S_pad = seq_tile, _round_up(S, seq_tile)
    num_tiles = S_pad // TS

    ids = jnp.asarray(input_ids, jnp.int32)
    if S_pad != S:                 # padded rows gather row 0; sliced off below
        ids = jnp.pad(ids, ((0, 0), (0, S_pad - S)))

    # ---- position handling --------------------------------------------------
    pos_mode = "none"
    pos_slab = pos_ids3 = pos_table_c = None
    pos_pad = pos_chunk = 0
    if add_position:
        if position_embeddings is None:
            raise ValueError("position_embeddings required for 'absolute' mode")
        P = position_embeddings.shape[0]
        if position_ids is None:
            shared_pids = jnp.arange(past_key_values_length,
                                     past_key_values_length + S, dtype=jnp.int32)
            pos_mode = "shared"
        else:
            pids = jnp.asarray(position_ids, jnp.int32)
            if pids.ndim == 2 and pids.shape[0] == B and B > 1:
                pos_mode = "per_batch"
            else:
                shared_pids = pids.reshape(-1)[:S]
                pos_mode = "shared"
        if pos_mode == "shared":
            # Contiguous / shared positions: a plain (S, H) slab, pipelined by
            # the sequence-tile index only (fetched once per tile, not per batch).
            pos_slab = jnp.take(position_embeddings, shared_pids, axis=0)
            if S_pad != S:
                pos_slab = jnp.pad(pos_slab, ((0, S_pad - S), (0, 0)))
        else:
            # Per-batch positions: gather in-kernel from the small resident
            # position table (no (B, S, H) slab materialized in HBM).
            pid2 = pids[:, :S]
            if S_pad != S:
                pid2 = jnp.pad(pid2, ((0, 0), (0, S_pad - S)))
            pos_ids3 = pid2.reshape(B, S_pad, 1)
            pos_pad, pos_chunk = _pad_rows_for_onehot(P)
            pos_table_c = position_embeddings.astype(compute_dtype)
            if pos_pad != P:
                pos_table_c = jnp.pad(pos_table_c, ((0, pos_pad - P), (0, 0)))

    # ---- path selection (resident one-hot vs HBM DMA gather) ----------------
    vocab_pad, vocab_chunk = _pad_rows_for_onehot(V)
    csize = compute_dtype.itemsize
    osize = jnp.dtype(out_dtype).itemsize
    pos_table_bytes = pos_pad * H * csize if pos_mode == "per_batch" else 0
    pos_slab_bytes = (2 * TS * H * jnp.dtype(position_embeddings.dtype).itemsize
                      if pos_mode == "shared" else 0)
    ids_block_bytes = 2 * TS * 128 * 4          # (TS, 1) int32 block, lane-padded
    working_bytes = (2 * TS * H * osize                      # out double-buffer
                     + pos_slab_bytes
                     + ids_block_bytes * (2 if pos_mode == "per_batch" else 1)
                     + 2 * TS * vocab_chunk * csize          # one-hot chunk temp
                     + TS * vocab_chunk * 4                  # iota temp
                     + 2 * TS * H * 4)                       # f32 accumulators
    resident_bytes = vocab_pad * H * csize + pos_table_bytes + working_bytes

    vmem_cap = _vmem_capacity_bytes()
    budget = (vmem_budget_bytes if vmem_budget_bytes is not None
              else int(vmem_cap * 0.75))
    use_resident = (not force_hbm_gather) and (resident_bytes <= budget)

    dims = _dim_semantics(num_tiles, B)
    out_shape = jax.ShapeDtypeStruct((B, S_pad, H), out_dtype)

    if use_resident:
        # ----- Path 1: resident table + chunked one-hot MXU gather ----------
        word_table_c = word_embeddings.astype(compute_dtype)
        if vocab_pad != V:
            word_table_c = jnp.pad(word_table_c, ((0, vocab_pad - V), (0, 0)))

        in_specs = [pl.BlockSpec((None, TS, 1), lambda s, b: (b, s, 0)),
                    pl.BlockSpec(memory_space=pltpu.MemorySpace.VMEM)]
        args = [ids.reshape(B, S_pad, 1), word_table_c]
        if pos_mode == "shared":
            in_specs.append(pl.BlockSpec((TS, H), lambda s, b: (s, 0)))
            args.append(pos_slab)
        elif pos_mode == "per_batch":
            in_specs.append(pl.BlockSpec((None, TS, 1), lambda s, b: (b, s, 0)))
            in_specs.append(pl.BlockSpec(memory_space=pltpu.MemorySpace.VMEM))
            args.extend([pos_ids3, pos_table_c])

        kernel = functools.partial(
            _resident_kernel, vocab_pad=vocab_pad, vocab_chunk=vocab_chunk,
            pos_mode=pos_mode, pos_pad=pos_pad, pos_chunk=pos_chunk,
            compute_dtype=compute_dtype)

        hbm_bytes = (B * S_pad * H * osize + vocab_pad * H * csize
                     + pos_table_bytes
                     + (S_pad * H * 4 if pos_mode == "shared" else 0)
                     + B * S_pad * 4 * (2 if pos_mode == "per_batch" else 1))
        cost = pl.CostEstimate(flops=2 * B * S_pad * H, transcendentals=0,
                               bytes_accessed=int(hbm_bytes))
        vmem_limit = int(min(vmem_cap, max(resident_bytes + (8 << 20), 32 << 20)))

        out = pl.pallas_call(
            kernel,
            out_shape=out_shape,
            grid=(num_tiles, B),
            in_specs=in_specs,
            out_specs=pl.BlockSpec((None, TS, H), lambda s, b: (b, s, 0)),
            compiler_params=pltpu.CompilerParams(
                dimension_semantics=dims, vmem_limit_bytes=vmem_limit),
            cost_estimate=cost,
        )(*args)
    else:
        # ----- Path 2: HBM table + SMEM ids + bounded-ring DMA row gather ---
        word_itemsize = jnp.dtype(word_embeddings.dtype).itemsize
        nsem = max(2, min(hbm_gather_inflight, TS))

        in_specs = [pl.BlockSpec(memory_space=pl.ANY)]        # word table stays in HBM
        args = [word_embeddings]
        if pos_mode == "shared":
            in_specs.append(pl.BlockSpec((TS, H), lambda s, b, ids_ref: (s, 0)))
            args.append(pos_slab)
        elif pos_mode == "per_batch":
            in_specs.append(pl.BlockSpec((None, TS, 1),
                                         lambda s, b, ids_ref: (b, s, 0)))
            in_specs.append(pl.BlockSpec(memory_space=pltpu.MemorySpace.VMEM))
            args.extend([pos_ids3, pos_table_c])

        kernel = functools.partial(
            _hbm_gather_kernel, seq_pad=S_pad, ts=TS, nsem=nsem,
            pos_mode=pos_mode, pos_pad=pos_pad, pos_chunk=pos_chunk,
            compute_dtype=compute_dtype)

        hbm_bytes = (B * S_pad * H * (osize + word_itemsize)
                     + pos_table_bytes
                     + (S_pad * H * 4 if pos_mode == "shared" else 0)
                     + B * S_pad * 4 * (2 if pos_mode == "per_batch" else 1))
        cost = pl.CostEstimate(flops=2 * B * S_pad * H, transcendentals=0,
                               bytes_accessed=int(hbm_bytes))

        hbm_working = (2 * TS * H * osize + TS * H * word_itemsize
                       + pos_slab_bytes + pos_table_bytes
                       + (ids_block_bytes if pos_mode == "per_batch" else 0)
                       + TS * pos_chunk * (csize + 4)
                       + 2 * TS * H * 4)
        vmem_limit = int(min(vmem_cap, max(hbm_working + (8 << 20), 32 << 20)))

        grid_spec = pltpu.PrefetchScalarGridSpec(
            num_scalar_prefetch=1,
            grid=(num_tiles, B),
            in_specs=in_specs,
            out_specs=pl.BlockSpec((None, TS, H),
                                   lambda s, b, ids_ref: (b, s, 0)),
            scratch_shapes=[pltpu.VMEM((TS, H), word_embeddings.dtype),
                            pltpu.SemaphoreType.DMA((nsem,))])

        out = pl.pallas_call(
            kernel,
            out_shape=out_shape,
            grid_spec=grid_spec,
            compiler_params=pltpu.CompilerParams(
                dimension_semantics=dims, vmem_limit_bytes=vmem_limit),
            cost_estimate=cost,
        )(ids.reshape(-1), *args)

    if S_pad != S:
        out = out[:, :S, :]
    return out


# ---------------------------------------------------------------------------
# Reference + demo
# ---------------------------------------------------------------------------
def _reference(input_ids, word, pos_table=None, position_ids=None,
               position_embedding_type="absolute", past_key_values_length=0):
    emb = jnp.take(word, input_ids, axis=0)
    if position_embedding_type == "absolute":
        if position_ids is None:
            s = input_ids.shape[1]
            position_ids = jnp.arange(past_key_values_length,
                                      past_key_values_length + s)[None, :]
        emb = emb + jnp.take(pos_table, position_ids, axis=0)
    return emb


if __name__ == "__main__":
    ATOL = 2e-3   # bf16-rounded table values vs f32 reference at 0.02 scale

    def make_case(key, vocab, hidden, max_pos, batch, seq, pad_id=0):
        k1, k2, k3, k4 = jax.random.split(key, 4)
        word = jax.random.normal(k1, (vocab, hidden), jnp.float32) * 0.02
        word = word.at[pad_id].set(0.0)   # nn.Embedding(padding_idx=...) zero row
        pos = jax.random.normal(k2, (max_pos, hidden), jnp.float32) * 0.02
        ids = jax.random.randint(k3, (batch, seq), 0, vocab, dtype=jnp.int32)
        ids = ids.at[0, 0].set(pad_id)
        pids = jax.random.randint(k4, (batch, seq), 0, max_pos, dtype=jnp.int32)
        return word, pos, ids, pids

    key = jax.random.PRNGKey(0)
    k1, k2, k3 = jax.random.split(key, 3)

    # 1) Resident one-hot path, default shared (arange) positions, past_kv=2.
    word, pos, ids, _ = make_case(k1, vocab=64, hidden=128, max_pos=64,
                                  batch=2, seq=8)
    out = jax.block_until_ready(cell_spatial_foundation_embeddings(
        ids, word, pos, past_key_values_length=2))
    ref = _reference(ids, word, pos, past_key_values_length=2)
    assert out.shape == ref.shape
    assert jnp.allclose(out, ref, atol=ATOL), "resident/shared mismatch"

    # 2) Resident path: chunked vocab (2 chunks), multi-tile grid, per-batch
    #    position_ids gathered in-kernel from the resident position table.
    word, pos, ids, pids = make_case(k2, vocab=2048, hidden=256, max_pos=96,
                                     batch=2, seq=32)
    out = jax.block_until_ready(cell_spatial_foundation_embeddings(
        ids, word, pos, position_ids=pids, seq_tile=16))
    ref = _reference(ids, word, pos, position_ids=pids)
    assert jnp.allclose(out, ref, atol=ATOL), "resident/per-batch mismatch"

    # 3) HBM DMA-gather path (forced), shared positions, padded sequence.
    word, pos, ids, pids = make_case(k3, vocab=256, hidden=128, max_pos=64,
                                     batch=2, seq=20)
    out = jax.block_until_ready(cell_spatial_foundation_embeddings(
        ids, word, pos, seq_tile=8, force_hbm_gather=True))
    ref = _reference(ids, word, pos)
    assert jnp.allclose(out, ref, atol=ATOL), "hbm/shared mismatch"

    # 4) HBM DMA-gather path + per-batch position_ids.
    out = jax.block_until_ready(cell_spatial_foundation_embeddings(
        ids, word, pos, position_ids=pids, seq_tile=8, force_hbm_gather=True))
    ref = _reference(ids, word, pos, position_ids=pids)
    assert jnp.allclose(out, ref, atol=ATOL), "hbm/per-batch mismatch"

    print("KERNEL_OK")
</pallas_src>

<mosaic_0001>
module attributes {stable_mosaic.version = 11 : i64} {
  func.func @_resident_kernel(%arg0: i32, %arg1: i32, %arg2: memref<1x8x1xi32, #tpu.memory_space<vmem>>, %arg3: memref<128x128xbf16, #tpu.memory_space<vmem>>, %arg4: memref<8x128xf32, #tpu.memory_space<vmem>>, %arg5: memref<1x8x128xf32, #tpu.memory_space<vmem>>) attributes {dimension_semantics = [#tpu.dimension_semantics<arbitrary>, #tpu.dimension_semantics<parallel>], iteration_bounds = array<i64: 1, 2>, scalar_prefetch = 0 : i64, scratch_operands = 0 : i64, tpu.core_type = #tpu.core_type<tc>, window_params = [{transform_indices = @transform_0, window_bounds = array<i64: 1, 8, 1>}, {pipeline_mode = #tpu.pipeline_mode<synchronous>, transform_indices = @transform_1, window_bounds = array<i64: 128, 128>}, {transform_indices = @transform_2, window_bounds = array<i64: 8, 128>}, {transform_indices = @transform_3, window_bounds = array<i64: 1, 8, 128>}]} {
    %c0 = arith.constant 0 : index
    %c0_0 = arith.constant 0 : index
    %c0_1 = arith.constant 0 : index
    %0 = vector.load %arg2[%c0, %c0_0, %c0_1] : memref<1x8x1xi32, #tpu.memory_space<vmem>>, vector<1x8x1xi32>
    %1 = vector.shape_cast %0 : vector<1x8x1xi32> to vector<8x1xi32>
    %c0_2 = arith.constant 0 : index
    %c0_3 = arith.constant 0 : index
    %2 = vector.load %arg3[%c0_2, %c0_3] : memref<128x128xbf16, #tpu.memory_space<vmem>>, vector<128x128xbf16>
    %3 = tpu.iota {dimensions = array<i32: 1>} : vector<8x128xi32>
    %c0_i32 = arith.constant 0 : i32
    %4 = vector.broadcast %c0_i32 : i32 to vector<8x128xi32>
    %5 = arith.addi %4, %3 : vector<8x128xi32>
    %6 = vector.broadcast %1 : vector<8x1xi32> to vector<8x128xi32>
    %7 = arith.cmpi eq, %6, %5 : vector<8x128xi32>
    %8 = arith.extui %7 : vector<8x128xi1> to vector<8x128xi32>
    %9 = arith.sitofp %8 : vector<8x128xi32> to vector<8x128xf32>
    %10 = arith.truncf %9 : vector<8x128xf32> to vector<8x128xbf16>
    %cst = arith.constant dense<0.000000e+00> : vector<8x128xf32>
    %11 = tpu.matmul %10, %2, %cst {dimension_numbers = #tpu.dot_dimension_numbers<[1], [0], [0], [1], [0, 0, 1, 1], [], []>} : vector<8x128xbf16>, vector<128x128xbf16>, vector<8x128xf32> -> vector<8x128xf32>
    %c0_4 = arith.constant 0 : index
    %c0_5 = arith.constant 0 : index
    %12 = vector.load %arg4[%c0_4, %c0_5] : memref<8x128xf32, #tpu.memory_space<vmem>>, vector<8x128xf32>
    %13 = arith.addf %11, %12 : vector<8x128xf32>
    %c0_6 = arith.constant 0 : index
    %c0_7 = arith.constant 0 : index
    %c0_8 = arith.constant 0 : index
    %14 = vector.load %arg5[%c0_6, %c0_7, %c0_8] : memref<1x8x128xf32, #tpu.memory_space<vmem>>, vector<1x8x128xf32>
    %15 = vector.shape_cast %14 : vector<1x8x128xf32> to vector<8x128xf32>
    %16 = vector.shape_cast %13 : vector<8x128xf32> to vector<1x8x128xf32>
    tpu.vector_store %arg5[%c0_6, %c0_7, %c0_8], %16 {strides = array<i32>} : memref<1x8x128xf32, #tpu.memory_space<vmem>>, vector<1x8x128xf32>,
    return
  }
  func.func @transform_0(%arg0: i32, %arg1: i32) -> (i32, i32, i32) {
    %c0_i32 = arith.constant 0 : i32
    %c0_i32_0 = arith.constant 0 : i32
    return %arg1, %arg0, %c0_i32 : i32, i32, i32
  }
  func.func @transform_1(%arg0: i32, %arg1: i32) -> (i32, i32) {
    %c0_i32 = arith.constant 0 : i32
    %c0_i32_0 = arith.constant 0 : i32
    %c0_i32_1 = arith.constant 0 : i32
    return %c0_i32, %c0_i32_0 : i32, i32
  }
  func.func @transform_2(%arg0: i32, %arg1: i32) -> (i32, i32) {
    %c0_i32 = arith.constant 0 : i32
    %c0_i32_0 = arith.constant 0 : i32
    return %arg0, %c0_i32 : i32, i32
  }
  func.func @transform_3(%arg0: i32, %arg1: i32) -> (i32, i32, i32) {
    %c0_i32 = arith.constant 0 : i32
    %c0_i32_0 = arith.constant 0 : i32
    return %arg1, %arg0, %c0_i32 : i32, i32, i32
  }
}

</mosaic_0001>

<bundles_post_ra>
// kernel: tpu_custom_call.1
= control target key start
LH: loop header
LB: loop body
LE: loop exit
PB: predicated region body
PF: predicated region fallthrough
CT: control target
= control target key end

     0   :  { %8 = vsyncpa [#allocation3], 0  ;;  %s881_s0 = inlined_call_operand.vmem [shape: s32[2,8,1], index: 0, kind: input, shape index: {}]   ;;  %s882_s1 = inlined_call_operand.hbm [shape: bf16[128,128], index: 1, kind: input, shape index: {}]   ;;  %s883_s2 = inlined_call_operand.vmem [shape: f32[8,128], index: 2, kind: input, shape index: {}]   ;;  %s884_s3 = inlined_call_operand.hbm [shape: f32[2,8,128], index: 3, kind: output, shape index: {}]  }
   0x1   :  { %9 = vsyncpa [#allocation4], 0 }
   0x2   :  { %11 = vsyncpa [#allocation4 + $0x1], 0  ;;  %s728_s12 = smov 0   ;;  %s730_s13 = smov 0  }
   0x3   :  { %s732_s14 = smov 0   ;;  %s734_s15 = smov 0  }
   0x4   :  { %s736_s16 = smov 0   ;;  %s738_s17 = smov 0  }
   0x5 LB: > { %s453_s18 = sadd.s32 4294967295, %s698_s17   ;;  %s454_s19 = sadd.s32 4294967294, %s698_s17   ;;  %s698_s17 = sphi %s738_s17, %s17_s17   ;;  %s694_s16 = sphi %s736_s16, %s902_s16   ;;  %s690_s15 = sphi %s734_s15, %s901_s15   ;;  %s686_s14 = sphi %s732_s14, %s900_s14   ;;  %s682_s13 = sphi %s730_s13, %s899_s13   ;;  %s678_s12 = sphi %s728_s12, %s898_s12  }
   0x6   : > { %s26_s20 = sadd.s32 1, %s694_s16  ;;  %s113_s21 = sadd.s32 1, %s686_s14 }
   0x7   : > { %p27_p0 = scmp.ge.s32.totalorder %s26_s20, 2  ;;  %p123_p1 = scmp.ne.s32.totalorder %s686_s14, %s682_s13 }
   0x8   : > { %p124_p2 = scmp.eq.s32.totalorder %s453_s18, 1  ;;  %p129_p3 = scmp.ne.s32.totalorder %s682_s13, %s678_s12 }
   0x9   : > { %s904_s20 = smov (%p27_p0, %s26_s20), 0  ;;  %p130_p5 = scmp.eq.s32.totalorder %s454_s19, 1 }
   0xa   : > { %p768_p4 = por %p124_p2, %p123_p1  ;;  %s108_s23 = ssub.s32 %s694_s16, %s904_s20 }
   0xb   : > { %p455_p6 = scmp.ge.s32.totalorder %s698_s17, 1  ;;  %p111_p7 = scmp.eq.s32.totalorder %s108_s23, 0 }
   0xc   : > { %s889_s22 = scalar_select %p768_p4, 1, 0 }
   0xd   : > { %p775_p8 = por %p130_p5, %p129_p3  ;;  %p137_p9 = scmp.lt.s32.totalorder %s698_s17, 3 }
   0xe   : > { %s781_s25 = scalar_select %p111_p7, %s686_s14, %s113_s21  }
   0xf   : > { %s890_s24 = scalar_select %p775_p8, 1, 0 }
  0x10   : > { %p783_p10 = pnand %p455_p6, %p137_p9  ;;  %p787_p11 = scmp.eq.s32.totalorder %s453_s18, 0 }
  0x11   : > { %s700_s28 = smov [#allocation2]   ;;  %s588_s6 = scalar_lea.hbm %s882_s1, 1024 }
  0x12   : > { %s891_s26 = scalar_select %p783_p10, 1, 0 }
  0x13   : > { %s892_s27 = scalar_select %p787_p11, 1, 0 }
  0x14   : > { %p513_p12 = pneg %p783_p10  ;;  %s149_s29 = sshll.u32 %s700_s28, 4  ;;  %s150_s29 = int_to_ptr.vmem [resolvable:$true] %s149_s29 }
  0x15   : > { %p589_p0 = scmp.ne.s32.totalorder %s882_s1, %s588_s6  ;;  %p595_p5 = scmp.lt.u32.totalorder %s588_s6, %s882_s1 }
  0x16   : > { %p795_p13 = pnand %p787_p11, %p513_p12 }
  0x18   : > { %p590_p1 = pneg %p795_p13 }
  0x1a   : > { %p591_p2 = pnand %p590_p1, %p589_p0 }
  0x1c   : > { %p592_p3 = pneg %p591_p2 }
  0x1e   : > { %p597_p6 = pnand %p595_p5, %p592_p3 }
  0x20   : > { %600 = shalt.err (!%p597_p6)
}
  0x21   : > { %s601_s11 = scalar_lea.vmem %s150_s29, 1024  ;;  %p609_p8 = scmp.lt.s32.totalorder %s150_s29, %s150_s29 }
  0x22   : > { %p602_p7 = scmp.ne.s32.totalorder %s150_s29, %s601_s11  ;;  %p610_p4 = scmp.lt.s32.totalorder %s601_s11, %s601_s11 }
  0x24   : > { %p604_p9 = pnand %p602_p7, %p590_p1  ;;  %p611_p11 = por %p610_p4, %p609_p8 }
  0x26   : > { %p605_p12 = pneg %p604_p9 }
  0x28   : > { %p612_p10 = pnand %p611_p11, %p605_p12 }
  0x2a   : > { %615 = shalt.err (!%p612_p10)
}
  0x2b   : > { %s701_s18 = smov 64   ;;  %s702_s19 = smov 4  }
  0x2c   : > { %516 = dma.hbm_to_vmem [thread:$0]  (!%p795_p13), %s882_s1, 1024, %s150_s29, [#allocation3], %s701_s18, %s701_s18, %s702_s19  }
  0x2d   : > { %p894_p0 = scmp.ne.s32.totalorder %s891_s26, 0 }
  0x2e   : > { %p895_p2 = scmp.ne.s32.totalorder (!%p894_p0), %s892_s27, 0 }
  0x2f   : > { %182 = sbr.rel (%p894_p0) target bundleno = 420 (0x1a4), region = 32 }
  0x36   : > { %669 = dma.done.wait (%p895_p2), [#allocation3], 1024  }
  0x37   : > { %671 = vsyncadd (%p895_p2), [#allocation3], 4294966272  ;;  %p212_p4 = scmp.lt.s32.totalorder %s690_s15, 1  ;;  %v703_v0 = vmov 0   ;;  %v704_v1 = vmov 0.0   ;;  %v580_v3 = vld [vmem:[#allocation2] sm:$0xff]   ;;  %v241_v11 = vlaneseq }
  0x38   : > { %579 = vset.pattern.permute.xlu0 %v703_v0  ;;  %487 = vmatprep.subr.bf16.mxu0 %v704_v1  ;;  %vm705_vm0 = vmmov 0   ;;  %v581_v4 = vld [vmem:[#allocation2 + $0x8] sm:$0xff]   ;;  %v582_v5 = vld [vmem:[#allocation2 + $0x10] sm:$0xff]   ;;  %v583_v6 = vld [vmem:[#allocation2 + $0x18] sm:$0xff]   ;;  %v706_v14 = vmov 1.0|1.0  }
  0x39   : > { %s213_s28 = scalar_select %p212_p4, %s690_s15, 1  ;;  %503 = vmatprep.mubr.msk.bf16.mxu0 %vm705_vm0, %v704_v1  ;;  %488 = vmatpush3.bf16.msra.mxu0 %v580_v3  ;;  %v584_v7 = vld [vmem:[#allocation2 + $0x20] sm:$0xff]   ;;  %v585_v8 = vld [vmem:[#allocation2 + $0x28] sm:$0xff]   ;;  %v586_v9 = vld [vmem:[#allocation2 + $0x30] sm:$0xff]   ;;  %v242_v12 = vand.u32 127, %v241_v11 }
  0x3a   : > { %489 = vmatprep.subr.bf16.mxu0 %v704_v1  ;;  %v587_v10 = vld [vmem:[#allocation2 + $0x38] sm:$0xff]   ;;  %s209_s27 = sand.u32 1, %s682_s13   ;;  %v250_v15 = vld [vmem:[%s883_s2] sm:$0xff]  ;;  %s475_s8 = sshll.u32 %s690_s15, 7 }
  0x3b   : > { %s462_s30 = sshll.u32 %s213_s28, 3  ;;  %s461_s5 = sshll.u32 %s209_s27, 3 }
  0x3c   : > { %s218_s26 = scalar_lea.vmem %s881_s0, %s462_s30  ;;  %s211_s9 = scalar_lea.vmem [#allocation5], %s461_s5 }
  0x3d   : > { %v224_v2 = vld [vmem:[%s218_s26] sm:$0xff]  ;;  %490 = vmatpush3.bf16.msra.mxu0 %v581_v4  ;;  %s355_s10 = sshll.u32 %s211_s9, 4  ;;  %s834_s19 = scalar_lea.hbm %s884_s3, %s475_s8  ;;  %s836_s10 = int_to_ptr.vmem [resolvable:$true] %s355_s10 }
  0x3e   : > { %244 = vperm.xlu0 %579, %v224_v2   ;;  %491 = vmatprep.subr.bf16.mxu0 %v704_v1  ;;  %s341_s21 = scalar_lea.sflag [#allocation4], %s209_s27  ;;  %s616_s15 = scalar_lea.vmem %s836_s10, 128 }
  0x3f   : > { %p617_p8 = scmp.ne.s32.totalorder %s836_s10, %s616_s15  ;;  %p896_p10 = scmp.ne.s32.totalorder %s889_s22, 0 }
  0x40   : > { %s707_s23 = smov [#allocation5]  }
  0x41   : > { %492 = vmatpush3.bf16.msra.mxu0 %v582_v5  ;;  %p618_p11 = pnand %p617_p8, %p896_p10  ;;  %s620_s28 = sshll.u32 %s707_s23, 4  ;;  %s621_s28 = int_to_ptr.vmem [resolvable:$false] %s620_s28 }
  0x42   : > { %493 = vmatprep.subr.bf16.mxu0 %v704_v1  ;;  %s622_s30 = scalar_lea.vmem %s621_s28, 256  ;;  %p623_p1 = scmp.lt.s32.totalorder %s836_s10, %s621_s28 }
  0x43   : > { %p619_p13 = pneg %p618_p11  ;;  %p624_p3 = scmp.lt.s32.totalorder %s622_s30, %s616_s15 }
  0x45   : > { %494 = vmatpush3.bf16.msra.mxu0 %v583_v6  ;;  %p625_p5 = por %p624_p3, %p623_p1 }
  0x46   : > { %495 = vmatprep.subr.bf16.mxu0 %v704_v1 }
  0x47   : > { %p626_p6 = pnand %p625_p5, %p619_p13 }
  0x49   : > { %496 = vmatpush3.bf16.msra.mxu0 %v584_v7 }
  0x4a   : > { %497 = vmatprep.subr.bf16.mxu0 %v704_v1 }
  0x4d   : > { %498 = vmatpush3.bf16.msra.mxu0 %v585_v8 }
  0x4e   : > { %499 = vmatprep.subr.bf16.mxu0 %v704_v1 }
  0x51   : > { %500 = vmatpush3.bf16.msra.mxu0 %v586_v9 }
  0x52   : > { %501 = vmatprep.subr.bf16.mxu0 %v704_v1 }
  0x55   : > { %502 = vmatpush3.bf16.msra.mxu0 %v587_v10 }
  0xbd   : > { %v245_v13 = vpop.permute.xlu0 %244 }
  0xbe   : > { %vm246_vm1 = vcmp.eq.s32.totalorder %v245_v13, %v242_v12 }
  0xbf   : > { %vm472_vm2 = vmpackc.low %vm246_vm1, %vm246_vm1 }
  0xc0   : > { %504 = vmatmul.mubr.msk.bf16.vlgmr.msra.gmra.mrb[0].mxu0 %vm472_vm2, %v706_v14 }
 0x193   : > { %v333_v16 = vpop.f32.mrb[0].mxu0 }
 0x194   : > { %v334_v17 = vadd.f32 %v333_v16, %v250_v15  ;;  %v505_v18 = vpop.f32.mrb[1].mxu0 }
 0x195   : > { %v336_v19 = vpop.f32.mrb[2].mxu0 }
 0x196   : > { %339 = vst [vmem:[%s211_s9] sm:$0xff] %v334_v17  ;;  %v506_v20 = vpop.f32.mrb[3].mxu0 }
 0x197   : > { %629 = shalt.err (!%p626_p6)
}
 0x198   : > { %s630_s4 = scalar_lea.hbm %s834_s19, 128  ;;  %s634_s27 = scalar_lea.hbm %s884_s3, 256 }
 0x199   : > { %p631_p7 = scmp.ne.s32.totalorder %s834_s19, %s630_s4  ;;  %p635_p0 = scmp.lt.u32.totalorder %s834_s19, %s884_s3 }
 0x19a   : > { %p636_p2 = scmp.lt.u32.totalorder %s634_s27, %s630_s4  ;;  %p638_p8 = scmp.lt.u32.totalorder %s630_s4, %s834_s19 }
 0x19b   : > { %p632_p9 = pnand %p631_p7, %p896_p10 }
 0x19c   : > { %p637_p4 = por %p636_p2, %p635_p0 }
 0x19d   : > { %p633_p12 = pneg %p632_p9 }
 0x19e   : > { %p639_p11 = por %p638_p8, %p637_p4 }
 0x1a0   : > { %p640_p13 = pnand %p639_p11, %p633_p12 }
 0x1a2   : > { %643 = shalt.err (!%p640_p13)
}
 0x1a3   : > { %511 = dma.vmem_to_hbm [thread:$0]  (%p896_p10), %s836_s10, 128, %s834_s19, %s341_s21  }
 0x1a4 PF: > { %p523_p1 = scmp.ge.s32.totalorder %s698_s17, 2  ;;  %s367_s7 = sand.u32 1, %s678_s12  }
 0x1a5   : > { %p897_p3 = scmp.ne.s32.totalorder %s890_s24, 0  ;;  %s368_s8 = scalar_lea.sflag [#allocation4], %s367_s7 }
 0x1a7   : > { %p518_p5 = pnand %p523_p1, %p897_p3 }
 0x1a9   : > { %673 = dma.done.wait (!%p518_p5), %s368_s8, 128  }
 0x1aa   : > { %675 = vsyncadd (!%p518_p5), %s368_s8, 4294967168  ;;  %s17_s17 = sadd.s32 1, %s698_s17   ;;  %s898_s12 = smov %s682_s13 }
 0x1ab   : > { %p14_p6 = scmp.ge.s32.totalorder %s17_s17, 4   ;;  %s899_s13 = smov %s686_s14 }
 0x1ac   : > { %s900_s14 = smov %s781_s25  ;;  %s901_s15 = smov %s694_s16 }
 0x1ad   : > { %s902_s16 = smov %s904_s20  ;;  %16 = sbr.rel (!%p14_p6) target bundleno = 5 (0x5), region = 75 }
 0x1b4   :  { %373 = vsyncpa [#allocation3], 1 }
 0x1b5   :  { %375 = vsyncpa [#allocation3 + $0x1], 1 }
 0x1b6   :  { %376 = vsyncpa [#allocation4], 1 }
 0x1b7   :  { %378 = vsyncpa [#allocation4 + $0x1], 1 }

</bundles_post_ra>
